<compile_context>
chip_gen: v6e
topology: v6e:2x2x1
jax: 0.10.0
libtpu: 0.0.40
codegen_flags: <defaults>
</compile_context>

<pallas_src>
import functools

import jax
import jax.numpy as jnp
from jax.experimental import pallas as pl
from jax.experimental.pallas import tpu as pltpu

MARGIN = 1.0
EPS = 1e-6


def _round_up(x, m):
    return ((x + m - 1) // m) * m


def _contrastive_kernel(f1_ref, f2_ref, lab_ref, out_ref, *,
                        total_b, block_b, need_mask, margin):
    f1 = f1_ref[...].astype(jnp.float32)          # (block_b, D)
    f2 = f2_ref[...].astype(jnp.float32)          # (block_b, D)
    lab = lab_ref[...].astype(jnp.float32)        # (block_b, 1)

    diff = f1 - f2 + EPS
    d2 = jnp.sum(diff * diff, axis=-1, keepdims=True)       # (block_b, 1) = d^2
    d = jnp.sqrt(d2)                                         # (block_b, 1)

    hinge = jnp.maximum(margin - d, 0.0)
    # Reuse d2 for the positive term (== distance.pow(2) to within 1 ulp).
    loss = lab * d2 + (1.0 - lab) * (hinge * hinge)          # (block_b, 1)

    if need_mask:
        # Zero out padded rows of the last (padded) batch tile.
        i = pl.program_id(0)
        row = i * block_b + jax.lax.broadcasted_iota(jnp.int32, (block_b, 1), 0)
        loss = jnp.where(row < total_b, loss, 0.0)

    partial = jnp.sum(loss)                                  # per-block partial sum
    # Lane-dense (1, 128) store; wrapper reads lane 0 of each block.
    out_ref[...] = jnp.full((1, 128), partial, dtype=jnp.float32)


def contrastive_loss(features1, features2, labels, *, margin=MARGIN,
                     block_b=None, vmem_limit_bytes=48 * 1024 * 1024):
    """features1, features2: (B, D); labels: (B,). Returns scalar f32 mean loss."""
    B, D = features1.shape
    assert features2.shape == (B, D)
    assert labels.shape == (B,)

    itemsize = jnp.dtype(features1.dtype).itemsize
    # dtype-aware minimum sublane tile: f32 -> 8, bf16 -> 16, int8/fp8 -> 32.
    min_sublane = max(8, 32 // itemsize)

    if block_b is None:
        # ~4 MiB per feature input tile (lane dim pads to 128 in VMEM).
        bytes_per_row = max(1, _round_up(D, 128) * itemsize)
        budget_rows = (4 * 1024 * 1024) // bytes_per_row
        block_b = int(max(min_sublane, min(1024, budget_rows)))
        block_b = (block_b // min_sublane) * min_sublane
    else:
        block_b = _round_up(int(block_b), min_sublane)

    # Small problems: single block covering the whole (padded) batch.
    if B <= block_b:
        block_b = _round_up(B, min_sublane)

    B_pad = _round_up(B, block_b)
    need_mask = B_pad != B

    if need_mask:
        pad = B_pad - B
        features1 = jnp.pad(features1, ((0, pad), (0, 0)))
        features2 = jnp.pad(features2, ((0, pad), (0, 0)))
        labels = jnp.pad(labels, ((0, pad),))

    labels2d = labels.astype(jnp.float32).reshape(B_pad, 1)
    num_blocks = B_pad // block_b

    kernel = functools.partial(
        _contrastive_kernel,
        total_b=B, block_b=block_b, need_mask=need_mask, margin=float(margin),
    )

    out = pl.pallas_call(
        kernel,
        out_shape=jax.ShapeDtypeStruct((1, num_blocks * 128), jnp.float32),
        grid_spec=pltpu.PrefetchScalarGridSpec(
            num_scalar_prefetch=0,
            grid=(num_blocks,),
            in_specs=[
                pl.BlockSpec((block_b, D), lambda i: (i, 0)),
                pl.BlockSpec((block_b, D), lambda i: (i, 0)),
                pl.BlockSpec((block_b, 1), lambda i: (i, 0)),
            ],
            out_specs=pl.BlockSpec((1, 128), lambda i: (0, i)),
        ),
        compiler_params=pltpu.CompilerParams(
            dimension_semantics=("parallel",),
            vmem_limit_bytes=vmem_limit_bytes,
        ),
    )(features1, features2, labels2d)

    partials = out.reshape(num_blocks, 128)[:, 0]
    return jnp.sum(partials) / jnp.float32(B)


def contrastive_loss_ref(features1, features2, labels, margin=MARGIN):
    """Pure-JAX reference matching the PyTorch module."""
    diff = features1.astype(jnp.float32) - features2.astype(jnp.float32) + EPS
    d = jnp.sqrt(jnp.sum(diff * diff, axis=-1))
    lab = labels.astype(jnp.float32)
    loss = lab * d**2 + (1.0 - lab) * jnp.maximum(margin - d, 0.0) ** 2
    return jnp.mean(loss)


if __name__ == "__main__":
    key = jax.random.PRNGKey(0)

    # Case 1: small demo shape (single block, no masking).
    k1, k2, k3, k4, k5, k6, k7, k8, k9 = jax.random.split(key, 9)
    B, D = 8, 32
    f1 = jax.random.normal(k1, (B, D), dtype=jnp.float32)
    f2 = jax.random.normal(k2, (B, D), dtype=jnp.float32)
    lab = jax.random.bernoulli(k3, 0.5, (B,)).astype(jnp.float32)
    out = jax.block_until_ready(contrastive_loss(f1, f2, lab))
    ref = contrastive_loss_ref(f1, f2, lab)
    assert jnp.allclose(out, ref, rtol=1e-5, atol=1e-5), (out, ref)

    # Case 2: multi-block parallel path (divides evenly, forced small tile).
    B2, D2 = 256, 64
    g1 = jax.random.normal(k4, (B2, D2), dtype=jnp.float32)
    g2 = jax.random.normal(k5, (B2, D2), dtype=jnp.float32)
    glab = jax.random.bernoulli(k6, 0.5, (B2,)).astype(jnp.float32)
    out2 = jax.block_until_ready(contrastive_loss(g1, g2, glab, block_b=64))
    ref2 = contrastive_loss_ref(g1, g2, glab)
    assert jnp.allclose(out2, ref2, rtol=1e-5, atol=1e-5), (out2, ref2)

    # Case 3: ragged batch exercising padding + in-kernel masking.
    B3, D3 = 300, 64
    h1 = jax.random.normal(k7, (B3, D3), dtype=jnp.float32)
    h2 = jax.random.normal(k8, (B3, D3), dtype=jnp.float32)
    hlab = jax.random.bernoulli(k9, 0.5, (B3,)).astype(jnp.float32)
    out3 = jax.block_until_ready(contrastive_loss(h1, h2, hlab, block_b=128))
    ref3 = contrastive_loss_ref(h1, h2, hlab)
    assert jnp.allclose(out3, ref3, rtol=1e-5, atol=1e-5), (out3, ref3)

    print("KERNEL_OK")
</pallas_src>

<mosaic_0001>
module attributes {stable_mosaic.version = 11 : i64} {
  func.func @_contrastive_kernel(%arg0: i32, %arg1: memref<8x32xf32, #tpu.memory_space<vmem>>, %arg2: memref<8x32xf32, #tpu.memory_space<vmem>>, %arg3: memref<8x1xf32, #tpu.memory_space<vmem>>, %arg4: memref<1x128xf32, #tpu.memory_space<vmem>>) attributes {dimension_semantics = [#tpu.dimension_semantics<parallel>], iteration_bounds = array<i64: 1>, scalar_prefetch = 0 : i64, scratch_operands = 0 : i64, tpu.core_type = #tpu.core_type<tc>, window_params = [{transform_indices = @transform_0, window_bounds = array<i64: 8, 32>}, {transform_indices = @transform_1, window_bounds = array<i64: 8, 32>}, {transform_indices = @transform_2, window_bounds = array<i64: 8, 1>}, {transform_indices = @transform_3, window_bounds = array<i64: 1, 128>}]} {
    %c0 = arith.constant 0 : index
    %c0_0 = arith.constant 0 : index
    %0 = vector.load %arg1[%c0, %c0_0] : memref<8x32xf32, #tpu.memory_space<vmem>>, vector<8x32xf32>
    %c0_1 = arith.constant 0 : index
    %c0_2 = arith.constant 0 : index
    %1 = vector.load %arg2[%c0_1, %c0_2] : memref<8x32xf32, #tpu.memory_space<vmem>>, vector<8x32xf32>
    %c0_3 = arith.constant 0 : index
    %c0_4 = arith.constant 0 : index
    %2 = vector.load %arg3[%c0_3, %c0_4] : memref<8x1xf32, #tpu.memory_space<vmem>>, vector<8x1xf32>
    %3 = arith.subf %0, %1 : vector<8x32xf32>
    %cst = arith.constant 9.99999997E-7 : f32
    %4 = vector.broadcast %cst : f32 to vector<8x32xf32>
    %5 = arith.addf %3, %4 : vector<8x32xf32>
    %6 = arith.mulf %5, %5 : vector<8x32xf32>
    %cst_5 = arith.constant dense<0.000000e+00> : vector<8xf32>
    %7 = vector.multi_reduction <add>, %6, %cst_5 [1] : vector<8x32xf32> to vector<8xf32>
    %8 = vector.shape_cast %7 : vector<8xf32> to vector<8x1xf32>
    %9 = math.sqrt %8 : vector<8x1xf32>
    %cst_6 = arith.constant 1.000000e+00 : f32
    %10 = vector.broadcast %cst_6 : f32 to vector<8x1xf32>
    %11 = arith.subf %10, %9 : vector<8x1xf32>
    %cst_7 = arith.constant 0.000000e+00 : f32
    %12 = vector.broadcast %cst_7 : f32 to vector<8x1xf32>
    %13 = arith.maximumf %11, %12 : vector<8x1xf32>
    %14 = arith.mulf %2, %8 : vector<8x1xf32>
    %cst_8 = arith.constant 1.000000e+00 : f32
    %15 = vector.broadcast %cst_8 : f32 to vector<8x1xf32>
    %16 = arith.subf %15, %2 : vector<8x1xf32>
    %17 = arith.mulf %13, %13 : vector<8x1xf32>
    %18 = arith.mulf %16, %17 : vector<8x1xf32>
    %19 = arith.addf %14, %18 : vector<8x1xf32>
    %20 = vector.shape_cast %19 : vector<8x1xf32> to vector<1x8x1xf32>
    %cst_9 = arith.constant dense<0.000000e+00> : vector<1xf32>
    %21 = vector.multi_reduction <add>, %20, %cst_9 [1, 2] : vector<1x8x1xf32> to vector<1xf32>
    %22 = vector.shape_cast %21 : vector<1xf32> to vector<1x1x1xf32>
    %23 = vector.extract %22[0, 0, 0] : f32 from vector<1x1x1xf32>
    %24 = vector.broadcast %23 : f32 to vector<1x128xf32>
    %c0_10 = arith.constant 0 : index
    %c0_11 = arith.constant 0 : index
    %25 = vector.load %arg4[%c0_10, %c0_11] : memref<1x128xf32, #tpu.memory_space<vmem>>, vector<1x128xf32>
    tpu.vector_store %arg4[%c0_10, %c0_11], %24 {strides = array<i32>} : memref<1x128xf32, #tpu.memory_space<vmem>>, vector<1x128xf32>,
    return
  }
  func.func @transform_0(%arg0: i32) -> (i32, i32) {
    %c0_i32 = arith.constant 0 : i32
    %c0_i32_0 = arith.constant 0 : i32
    return %arg0, %c0_i32 : i32, i32
  }
  func.func @transform_1(%arg0: i32) -> (i32, i32) {
    %c0_i32 = arith.constant 0 : i32
    %c0_i32_0 = arith.constant 0 : i32
    return %arg0, %c0_i32 : i32, i32
  }
  func.func @transform_2(%arg0: i32) -> (i32, i32) {
    %c0_i32 = arith.constant 0 : i32
    %c0_i32_0 = arith.constant 0 : i32
    return %arg0, %c0_i32 : i32, i32
  }
  func.func @transform_3(%arg0: i32) -> (i32, i32) {
    %c0_i32 = arith.constant 0 : i32
    %c0_i32_0 = arith.constant 0 : i32
    return %c0_i32, %arg0 : i32, i32
  }
}

</mosaic_0001>

<bundles_post_ra>
// kernel: tpu_custom_call.1
= control target key start
LH: loop header
LB: loop body
LE: loop exit
PB: predicated region body
PF: predicated region fallthrough
CT: control target
= control target key end

     0   :  { %8 = vsyncpa [#allocation3], 0  ;;  %s163_s0 = inlined_call_operand.vmem [shape: f32[8,32], index: 0, kind: input, shape index: {}]   ;;  %s164_s1 = inlined_call_operand.hbm [shape: f32[8,32], index: 1, kind: input, shape index: {}]   ;;  %s165_s2 = inlined_call_operand.vmem [shape: f32[8,1], index: 2, kind: input, shape index: {}]   ;;  %s166_s3 = inlined_call_operand.hbm [shape: f32[1,128], index: 3, kind: output, shape index: {}]  }
   0x1   :  { %9 = vsyncpa [#allocation4], 0  ;;  %s129_s12 = smov [#allocation2]  }
   0x2   :  { %s18_s13 = sshll.u32 %s129_s12, 4  ;;  %s19_s13 = int_to_ptr.vmem [resolvable:$true] %s18_s13 }
   0x3   :  { %s93_s14 = scalar_lea.vmem %s19_s13, 128  ;;  %p98_p1 = scmp.lt.s32.totalorder %s19_s13, %s19_s13 }
   0x4   :  { %p94_p0 = scmp.ne.s32.totalorder %s19_s13, %s93_s14  ;;  %p99_p2 = scmp.lt.s32.totalorder %s93_s14, %s93_s14 }
   0x6   :  { %p100_p3 = por %p99_p2, %p98_p1 }
   0x8   :  { %p101_p4 = pnand %p100_p3, %p94_p0 }
   0xa   :  { %104 = shalt.err (!%p101_p4)
}
   0xb   :  { %21 = dma.hbm_to_vmem [thread:$0]  %s164_s1, 128, %s19_s13, [#allocation3]  }
   0xc   :  { %125 = dma.done.wait [#allocation3], 128  }
   0xd   :  { %126 = vsyncadd [#allocation3], 4294967168  ;;  %v27_v0 = vld [vmem:[%s163_s0] sm:$0xff]  ;;  %vm33_vm0 = vcmask 261120   ;;  %vm51_vm3 = vcmask 7168   ;;  %s130_s0 = smov [#allocation5]  }
   0xe   :  { %v28_v1 = vld [vmem:[#allocation2] sm:$0xff]  ;;  %s70_s20 = sshll.u32 %s130_s0, 4  ;;  %s71_s20 = int_to_ptr.vmem [resolvable:$true] %s70_s20 }
   0xf   :  { %v30_v2 = vsub.f32 %v27_v0, %v28_v1  ;;  %v29_v13 = vld [vmem:[%s165_s2] sm:$0xff]  ;;  %s105_s21 = scalar_lea.vmem %s71_s20, 16  ;;  %s109_s22 = scalar_lea.vmem %s71_s20, 32 }
  0x10   :  { %v47_v15 = vsub.f32 1.0, %v29_v13  ;;  %p106_p5 = scmp.ne.s32.totalorder %s71_s20, %s105_s21  ;;  %p110_p6 = scmp.lt.s32.totalorder %s71_s20, %s71_s20 }
  0x11   :  { %v31_v3 = vadd.f32 1e-06, %v30_v2  ;;  %p111_p7 = scmp.lt.s32.totalorder %s109_s22, %s105_s21 }
  0x13   :  { %v32_v4 = vmul.f32 %v31_v3, %v31_v3  ;;  %p112_p8 = por %p111_p7, %p110_p6 }
  0x15   :  { %v34_v5 = vsel %vm33_vm0, %v32_v4, 0.0  ;;  %p113_p9 = pnand %p112_p8, %p106_p5 }
  0x16   :  { %35 = vadd.xlane.f32.xlu0 %v34_v5 }
  0x9f   :  { %v36_v6 = vpop.xlane.xlu0 %35 }
  0xa0   :  { %83 = vrsqrt.f32 %v36_v6  ;;  %vm39_vm1 = vcmp.eq.f32.partialorder %v36_v6, inf  ;;  %v42_v9 = vand.u32 2147483648, %v36_v6  ;;  %vm41_vm2 = vcmp.eq.f32.partialorder %v36_v6, 0.0 }
  0xa1   :  { %v46_v17 = vmul.f32 %v36_v6, %v29_v13 }
  0xad   :  { %v84_v7 = vpop.eup %83 }
  0xae   :  { %v38_v8 = vmul.f32 %v84_v7, %v36_v6 }
  0xb0   :  { %v40_v10 = vsel %vm39_vm1, %v36_v6, %v38_v8 }
  0xb1   :  { %v43_v11 = vsel %vm41_vm2, %v42_v9, %v40_v10 }
  0xb2   :  { %v44_v12 = vsub.f32 1.0, %v43_v11 }
  0xb4   :  { %v45_v14 = vmax.f32 %v44_v12, 0.0 }
  0xb6   :  { %v48_v16 = vmul.f32 %v45_v14, %v45_v14 }
  0xb8   :  { %v49_v18 = vmul.f32 %v48_v16, %v47_v15 }
  0xba   :  { %v50_v19 = vadd.f32 %v49_v18, %v46_v17 }
  0xbc   :  { %v52_v20 = vsel %vm51_vm3, %v50_v19, 0.0 }
  0xbd   :  { %53 = vadd.xlane.f32.xlu0 %v52_v20 }
 0x146   :  { %v54_v21 = vpop.xlane.xlu0 %53 }
 0x147   :  { %v55_v22 = vrot.slane %v54_v21, 4 }
 0x149   :  { %v56_v23 = vadd.f32 %v55_v22, %v54_v21 }
 0x14b   :  { %v57_v24 = vrot.slane %v56_v23, 2 }
 0x14d   :  { %v58_v25 = vadd.f32 %v57_v24, %v56_v23 }
 0x14f   :  { %v59_v26 = vrot.slane %v58_v25, 1 }
 0x151   :  { %v60_v27 = vadd.f32 %v59_v26, %v58_v25 }
 0x153   :  { %79 = vpush %v60_v27 }
 0x184   :  { %s80_s2 = spop %79 }
 0x185   :  { %v62_v28 = vstv %s80_s2 }
 0x186   :  { %63 = vst [vmem:[#allocation5] sm:$0x1] %v62_v28 }
 0x187   :  { %116 = shalt.err (!%p113_p9)
}
 0x188   :  { %73 = dma.vmem_to_hbm [thread:$0]  %s71_s20, 16, %s166_s3, [#allocation4]  }
 0x189   :  { %127 = dma.done.wait [#allocation4], 16  }
 0x18a   :  { %128 = vsyncadd [#allocation4], 4294967280 }
 0x18b   :  { %77 = vsyncpa [#allocation3], 1 }
 0x18c   :  { %78 = vsyncpa [#allocation4], 1 }

</bundles_post_ra>
